<compile_context>
chip_gen: v6e
topology: v6e:2x2x1
jax: 0.10.0
libtpu: 0.0.40
codegen_flags: <defaults>
</compile_context>

<pallas_src>
import functools

import jax
import jax.numpy as jnp
from jax.experimental import pallas as pl
from jax.experimental.pallas import tpu as pltpu


def _round_up(x, m):
    return ((x + m - 1) // m) * m


def _rec_engine_kernel(xT_ref, w1b_ref, w2b_ref, oT_ref, *, in_dim, hidden):
    # Transposed, lane-dense layout: batch on the lane (last) axis.
    #   h = tanh(W1^T @ x + b1) : (hidden, TB)
    #   y = W2^T @ h + b2       : (out_dim, TB)
    w1t = w1b_ref[:, :in_dim]                                  # (hidden, in_dim)
    b1 = w1b_ref[:, in_dim:in_dim + 1].astype(jnp.float32)     # (hidden, 1)
    w2t = w2b_ref[:, :hidden]                                  # (out_dim, hidden)
    b2 = w2b_ref[:, hidden:hidden + 1].astype(jnp.float32)     # (out_dim, 1)

    h = jnp.dot(w1t, xT_ref[...], preferred_element_type=jnp.float32)
    h = jnp.tanh(h + b1)                                       # f32 EUP tanh
    y = jnp.dot(w2t, h.astype(w2t.dtype), preferred_element_type=jnp.float32)
    oT_ref[...] = (y + b2).astype(oT_ref.dtype)


def rec_engine_forward_t(xT, w1, b1, w2, b2, *, block_b=65536, out_dtype=None):
    """Transposed-layout entry point (preferred; no relayout passes).

    xT: (input_dim, B) activations with batch on the last (lane) axis.
    w1: (input_dim, hidden); b1: (1, hidden); w2: (hidden, output_dim); b2: (1, output_dim).
    Returns yT: (output_dim, B).
    """
    in_dim, B = xT.shape
    hidden = w1.shape[1]
    out_dim = w2.shape[1]
    out_dtype = xT.dtype if out_dtype is None else out_dtype

    # Consolidate the tiny resident operands: (W1^T | b1), (W2^T | b2).
    w_dtype = w1.dtype
    w1b = jnp.concatenate([w1.T, b1.reshape(hidden, 1).astype(w_dtype)], axis=1)
    w2b = jnp.concatenate([w2.T, b2.reshape(out_dim, 1).astype(w_dtype)], axis=1)

    in_itemsize = jnp.dtype(xT.dtype).itemsize
    out_itemsize = jnp.dtype(out_dtype).itemsize
    w_itemsize = jnp.dtype(w_dtype).itemsize

    # Batch tile: as large as possible (amortize ~0.35us per grid step), a
    # multiple of 128 lanes, no larger than the lane-rounded batch, capped so
    # the double-buffered working set (x + out blocks sublane-pad to 8) <= ~40 MiB.
    per_lane_bytes = 2 * 8 * (in_itemsize + out_itemsize)       # 2x double-buffered
    tb_cap = max(128, ((40 * 2**20) // per_lane_bytes) // 128 * 128)
    tb = min(_round_up(block_b, 128), _round_up(B, 128), tb_cap)
    n_tiles = pl.cdiv(B, tb)

    # Explicit scoped-VMEM limit: never below 32 MiB (safe on all gens), never
    # above 48 MiB (v7x physical VMEM is 64 MiB).
    vmem_est = tb * per_lane_bytes + (1 << 20)
    vmem_limit = int(min(48 * 2**20, max(32 * 2**20, int(1.25 * vmem_est))))

    cost = pl.CostEstimate(
        flops=2 * B * (in_dim * hidden + hidden * out_dim),
        transcendentals=B * hidden,
        bytes_accessed=(B * in_dim * in_itemsize
                        + B * out_dim * out_itemsize
                        + (w1b.size + w2b.size) * w_itemsize),
    )

    kernel = functools.partial(_rec_engine_kernel, in_dim=in_dim, hidden=hidden)

    yT = pl.pallas_call(
        kernel,
        out_shape=jax.ShapeDtypeStruct((out_dim, B), out_dtype),
        grid_spec=pltpu.PrefetchScalarGridSpec(
            num_scalar_prefetch=0,
            grid=(n_tiles,),
            in_specs=[
                pl.BlockSpec((in_dim, tb), lambda i: (0, i)),          # x tile, lane-dense
                pl.BlockSpec((hidden, in_dim + 1), lambda i: (0, 0)),  # (W1^T|b1), resident
                pl.BlockSpec((out_dim, hidden + 1), lambda i: (0, 0)),  # (W2^T|b2), resident
            ],
            # Ragged final block (B % tb != 0) is masked on writeback by Pallas.
            out_specs=pl.BlockSpec((out_dim, tb), lambda i: (0, i)),
        ),
        compiler_params=pltpu.CompilerParams(
            dimension_semantics=("parallel",),   # megacore sharding on v7x; no-op otherwise
            vmem_limit_bytes=vmem_limit,
        ),
        cost_estimate=cost,
    )(xT, w1b, w2b)
    return yT


def rec_engine_forward(x, w1, b1, w2, b2, *, block_b=65536):
    """Natural-layout convenience wrapper: x (B, in_dim) -> (B, out_dim).

    The two transposes here are XLA layout plumbing; for peak throughput the
    producer should hand (in_dim, B) and the consumer accept (out_dim, B) via
    rec_engine_forward_t (or this MLP should be fused into the adjacent kernel).
    """
    yT = rec_engine_forward_t(x.T, w1, b1, w2, b2, block_b=block_b)
    return yT.T


def init_params(key, input_dim=4, output_dim=2, dtype=jnp.float32):
    """Deterministic init mirroring nn.Linear shapes (stored transposed as (in, out))."""
    hidden = input_dim * 5
    k1, k2, k3, k4 = jax.random.split(key, 4)
    lim1 = 1.0 / jnp.sqrt(jnp.float32(input_dim))
    lim2 = 1.0 / jnp.sqrt(jnp.float32(hidden))
    w1 = jax.random.uniform(k1, (input_dim, hidden), dtype, -lim1, lim1)
    b1 = jax.random.uniform(k2, (1, hidden), dtype, -lim1, lim1)
    w2 = jax.random.uniform(k3, (hidden, output_dim), dtype, -lim2, lim2)
    b2 = jax.random.uniform(k4, (1, output_dim), dtype, -lim2, lim2)
    return w1, b1, w2, b2


def reference_forward(x, w1, b1, w2, b2):
    return jnp.tanh(x @ w1 + b1) @ w2 + b2


if __name__ == "__main__":
    key = jax.random.PRNGKey(0)
    kx, kp, kx2 = jax.random.split(key, 3)

    input_dim, output_dim = 4, 2
    w1, b1, w2, b2 = init_params(kp, input_dim, output_dim)

    # Small-batch check through the natural-layout compat wrapper
    # (single tile, ragged: 8 valid lanes of 128, rest masked on writeback).
    batch = 8
    x = jax.random.normal(kx, (batch, input_dim), jnp.float32)
    out = jax.block_until_ready(rec_engine_forward(x, w1, b1, w2, b2))
    ref = reference_forward(x, w1, b1, w2, b2)
    assert out.shape == (batch, output_dim)
    assert jnp.allclose(out, ref, atol=1e-5, rtol=1e-5)

    # Transposed-contract entry point with a multi-tile, ragged pipelined grid
    # (block_b=256 -> tb=256, n_tiles=4; final block has 232 valid lanes).
    batch2 = 1000
    x2 = jax.random.normal(kx2, (batch2, input_dim), jnp.float32)
    y2T = jax.block_until_ready(
        rec_engine_forward_t(x2.T, w1, b1, w2, b2, block_b=256))
    ref2 = reference_forward(x2, w1, b1, w2, b2)
    assert y2T.shape == (output_dim, batch2)
    assert jnp.allclose(y2T.T, ref2, atol=1e-5, rtol=1e-5)

    print("KERNEL_OK")
</pallas_src>

<mosaic_0001>
module attributes {stable_mosaic.version = 11 : i64} {
  func.func @_rec_engine_kernel(%arg0: i32, %arg1: memref<4x128xf32, #tpu.memory_space<vmem>>, %arg2: memref<20x5xf32, #tpu.memory_space<vmem>>, %arg3: memref<2x21xf32, #tpu.memory_space<vmem>>, %arg4: memref<2x128xf32, #tpu.memory_space<vmem>>) attributes {dimension_semantics = [#tpu.dimension_semantics<parallel>], iteration_bounds = array<i64: 1>, scalar_prefetch = 0 : i64, scratch_operands = 0 : i64, tpu.core_type = #tpu.core_type<tc>, window_params = [{transform_indices = @transform_0, window_bounds = array<i64: 4, 128>}, {pipeline_mode = #tpu.pipeline_mode<synchronous>, transform_indices = @transform_1, window_bounds = array<i64: 20, 5>}, {pipeline_mode = #tpu.pipeline_mode<synchronous>, transform_indices = @transform_2, window_bounds = array<i64: 2, 21>}, {transform_indices = @transform_3, window_bounds = array<i64: 2, 128>}]} {
    %c0 = arith.constant 0 : index
    %c0_0 = arith.constant 0 : index
    %0 = vector.load %arg2[%c0, %c0_0] : memref<20x5xf32, #tpu.memory_space<vmem>>, vector<20x4xf32>
    %c0_1 = arith.constant 0 : index
    %c4 = arith.constant 4 : index
    %1 = vector.load %arg2[%c0_1, %c4] : memref<20x5xf32, #tpu.memory_space<vmem>>, vector<20x1xf32>
    %c0_2 = arith.constant 0 : index
    %c0_3 = arith.constant 0 : index
    %2 = vector.load %arg3[%c0_2, %c0_3] : memref<2x21xf32, #tpu.memory_space<vmem>>, vector<2x20xf32>
    %c0_4 = arith.constant 0 : index
    %c20 = arith.constant 20 : index
    %3 = vector.load %arg3[%c0_4, %c20] : memref<2x21xf32, #tpu.memory_space<vmem>>, vector<2x1xf32>
    %c0_5 = arith.constant 0 : index
    %c0_6 = arith.constant 0 : index
    %4 = vector.load %arg1[%c0_5, %c0_6] : memref<4x128xf32, #tpu.memory_space<vmem>>, vector<4x128xf32>
    %cst = arith.constant dense<0.000000e+00> : vector<20x128xf32>
    %5 = tpu.matmul %0, %4, %cst {dimension_numbers = #tpu.dot_dimension_numbers<[1], [0], [0], [1], [0, 0, 1, 1], [], []>} : vector<20x4xf32>, vector<4x128xf32>, vector<20x128xf32> -> vector<20x128xf32>
    %6 = vector.broadcast %1 : vector<20x1xf32> to vector<20x128xf32>
    %7 = arith.addf %5, %6 : vector<20x128xf32>
    %8 = math.tanh %7 : vector<20x128xf32>
    %cst_7 = arith.constant dense<0.000000e+00> : vector<2x128xf32>
    %9 = tpu.matmul %2, %8, %cst_7 {dimension_numbers = #tpu.dot_dimension_numbers<[1], [0], [0], [1], [0, 0, 1, 1], [], []>} : vector<2x20xf32>, vector<20x128xf32>, vector<2x128xf32> -> vector<2x128xf32>
    %10 = vector.broadcast %3 : vector<2x1xf32> to vector<2x128xf32>
    %11 = arith.addf %9, %10 : vector<2x128xf32>
    %c0_8 = arith.constant 0 : index
    %c0_9 = arith.constant 0 : index
    %12 = vector.load %arg4[%c0_8, %c0_9] : memref<2x128xf32, #tpu.memory_space<vmem>>, vector<2x128xf32>
    tpu.vector_store %arg4[%c0_8, %c0_9], %11 {strides = array<i32>} : memref<2x128xf32, #tpu.memory_space<vmem>>, vector<2x128xf32>,
    return
  }
  func.func @transform_0(%arg0: i32) -> (i32, i32) {
    %c0_i32 = arith.constant 0 : i32
    %c0_i32_0 = arith.constant 0 : i32
    return %c0_i32, %arg0 : i32, i32
  }
  func.func @transform_1(%arg0: i32) -> (i32, i32) {
    %c0_i32 = arith.constant 0 : i32
    %c0_i32_0 = arith.constant 0 : i32
    %c0_i32_1 = arith.constant 0 : i32
    return %c0_i32, %c0_i32_0 : i32, i32
  }
  func.func @transform_2(%arg0: i32) -> (i32, i32) {
    %c0_i32 = arith.constant 0 : i32
    %c0_i32_0 = arith.constant 0 : i32
    %c0_i32_1 = arith.constant 0 : i32
    return %c0_i32, %c0_i32_0 : i32, i32
  }
  func.func @transform_3(%arg0: i32) -> (i32, i32) {
    %c0_i32 = arith.constant 0 : i32
    %c0_i32_0 = arith.constant 0 : i32
    return %c0_i32, %arg0 : i32, i32
  }
}

</mosaic_0001>

<bundles_post_ra>
// kernel: tpu_custom_call.1
= control target key start
LH: loop header
LB: loop body
LE: loop exit
PB: predicated region body
PF: predicated region fallthrough
CT: control target
= control target key end

     0   :  { %vm42_vm0 = vcmask 1043456   ;;  %v296_v2 = vmov 0.0   ;;  %vm297_vm1 = vmmov 0   ;;  %vm35_vm2 = vcmask 31744   ;;  %s348_s0 = inlined_call_operand.vmem [shape: f32[4,8], index: 0, kind: input, shape index: {}]   ;;  %s349_s1 = inlined_call_operand.vmem [shape: f32[20,5], index: 1, kind: input, shape index: {}]   ;;  %s350_s2 = inlined_call_operand.vmem [shape: f32[2,21], index: 2, kind: input, shape index: {}]   ;;  %s351_s3 = inlined_call_operand.hbm [shape: f32[2,8], index: 3, kind: output, shape index: {}]  }
   0x1   :  { %v19_v0 = vld [vmem:[%s348_s0] sm:$0xf]  ;;  %239 = vmatprep.subr.mxu0 %v296_v2  ;;  %241 = vmatprep.mubr.msk.f32.mxu0 %vm297_vm1, %v296_v2  ;;  %v298_v3 = vmov 4  }
   0x2   :  { %v15_v1 = vld [vmem:[%s349_s1] sm:$0xff]  ;;  %240 = vmatpush3.msk.msra.mxu0 %vm42_vm0, %v19_v0  ;;  %265 = vset.pattern.permute.xlu1 %v298_v3 }
   0x3   :  { %8 = vsyncpa [#allocation3], 0  ;;  %242 = vmatmul.mubr.msk.f32.vlgmr.msra.gmra.mxu0 %vm35_vm2, %v15_v1  ;;  %v17_v4 = vld [vmem:[%s349_s1 + $0x10] sm:$0xf]  ;;  %264 = vset.pattern.permute.xlu0 %v298_v3  ;;  %v16_v5 = vld [vmem:[%s349_s1 + $0x8] sm:$0xff]  ;;  %v299_v7 = vmov 20  }
   0x4   :  { %244 = vmatprep.mubr.msk.f32.mxu0 %vm297_vm1, %v296_v2  ;;  %32 = vperm.xlu0 %264, %v17_v4   ;;  %v18_v6 = vld [vmem:[%s350_s2] sm:$0x3]  ;;  %vm134_vm3 = vcmask 162816   ;;  %s300_s1 = smov [#allocation2]  }
   0x5   :  { %22 = vperm.xlu1 %265, %v15_v1   ;;  %250 = vmatprep.subr.mxu1 %v296_v2  ;;  %s217_s2 = sshll.u32 %s300_s1, 4  ;;  %s218_s2 = int_to_ptr.vmem [resolvable:$true] %s217_s2 }
   0x6   :  { %256 = vmatprep.mubr.msk.f32.mxu1 %vm297_vm1, %v296_v2  ;;  %s274_s21 = scalar_lea.vmem %s218_s2, 32  ;;  %p279_p1 = scmp.lt.s32.totalorder %s218_s2, %s218_s2 }
   0x7   :  { %245 = vmatmul.mubr.msk.f32.gmra.mxu0 %vm35_vm2, %v16_v5  ;;  %p275_p0 = scmp.ne.s32.totalorder %s218_s2, %s274_s21  ;;  %p280_p2 = scmp.lt.s32.totalorder %s274_s21, %s274_s21 }
   0x8   :  { %247 = vmatprep.mubr.msk.f32.mxu0 %vm297_vm1, %v296_v2  ;;  %27 = vperm.xlu0 %264, %v16_v5  }
   0x9   :  { %266 = vset.pattern.permute.xlu1 %v299_v7  ;;  %p281_p3 = por %p280_p2, %p279_p1 }
   0xa   :  { %131 = vperm.xlu1 %266, %v18_v6  }
   0xb   :  { %248 = vmatmul.mubr.msk.f32.gmra.mxu0 %vm35_vm2, %v17_v4  ;;  %p282_p4 = pnand %p281_p3, %p275_p0 }
   0xc   :  { %267 = vset.pattern.permute.xlu0 %v299_v7 }
  0x7f   :  { %v33_v8 = vpop.permute.xlu0 %32 }
  0x80   :  { %v23_v14 = vpop.permute.xlu1 %22 }
  0x83   :  { %v28_v12 = vpop.permute.xlu0 %27 }
  0x85   :  { %v132_v23 = vpop.permute.xlu1 %131 }
  0xc3   :  { %v112_v9 = vpop.f32.mrf.mxu0 }
  0xc4   :  { %v113_v19 = vadd.f32 %v112_v9, %v23_v14 }
  0xc5   :  { %v243_v10 = vpop.f32.mrf.mxu0 }
  0xc7   :  { %v117_v11 = vpop.f32.mrf.mxu0 }
  0xc8   :  { %v118_v16 = vadd.f32 %v117_v11, %v28_v12 }
  0xc9   :  { %v246_v13 = vpop.f32.mrf.mxu0 }
  0xcb   :  { %v122_v15 = vpop.f32.mrf.mxu0 }
  0xcc   :  { %v123_v17 = vadd.f32 %v122_v15, %v33_v8 }
  0xcd   :  { %v249_v18 = vpop.f32.mrf.mxu0 }
  0xce   :  { %268 = vtanh.f32 %v123_v17 }
  0xcf   :  { %270 = vtanh.f32 %v118_v16 }
  0xd0   :  { %272 = vtanh.f32 %v113_v19 }
  0xdb   :  { %v269_v20 = vpop.eup %268 }
  0xdc   :  { %251 = vmatpush3.msk.msra.mxu1 %vm42_vm0, %v269_v20  ;;  %v271_v21 = vpop.eup %270 }
  0xdd   :  { %252 = vmatprep.subr.mxu1 %v296_v2  ;;  %v273_v22 = vpop.eup %272 }
  0xde   :  { %253 = vmatpush3.msra.mxu1 %v271_v21 }
  0xdf   :  { %254 = vmatprep.subr.mxu1 %v296_v2 }
  0xe0   :  { %255 = vmatpush3.msra.mxu1 %v273_v22 }
  0xe1   :  { %257 = vmatmul.mubr.msk.f32.vlgmr.msra.gmra.mxu1 %vm134_vm3, %v18_v6 }
 0x1a1   :  { %v206_v24 = vpop.f32.mrf.mxu1 }
 0x1a2   :  { %v207_v25 = vadd.f32 %v206_v24, %v132_v23 }
 0x1a3   :  { %v258_v26 = vpop.f32.mrf.mxu1 }
 0x1a4   :  { %210 = vst [vmem:[#allocation2] sm:$0x3] %v207_v25 }
 0x1a5   :  { %285 = shalt.err (!%p282_p4)
}
 0x1a6   :  { %220 = dma.vmem_to_hbm [thread:$0]  %s218_s2, 32, %s351_s3, [#allocation3]  }
 0x1a7   :  { %294 = dma.done.wait [#allocation3], 32  }
 0x1a8   :  { %295 = vsyncadd [#allocation3], 4294967264 }
 0x1a9   :  { %224 = vsyncpa [#allocation3], 1 }

</bundles_post_ra>
